<compile_context>
chip_gen: v7x
topology: tpu7x:2x2x1
jax: 0.10.0
libtpu: 0.0.40
codegen_flags: <defaults>
</compile_context>

<pallas_src>
import functools

import jax
import jax.numpy as jnp
from jax.experimental import pallas as pl
from jax.experimental.pallas import tpu as pltpu


def _round_up(x: int, m: int) -> int:
    return ((x + m - 1) // m) * m


def _dtamer_tile_kernel(*refs, weighted: bool):
    if weighted:
        result_ref, target_ref, weights_ref, action_ref, out_ref = refs
    else:
        result_ref, target_ref, action_ref, out_ref = refs
        weights_ref = None

    res = result_ref[...].astype(jnp.float32)     # (A, TB)  actions x batch-lanes
    tgt = target_ref[...].astype(jnp.float32)     # (1, TB)
    act = action_ref[...]                         # (1, TB)  int32

    # q[b] = result[action[b], b] via select over a sublane iota + sublane reduce.
    row = jax.lax.broadcasted_iota(jnp.int32, res.shape, dimension=0)   # (A, TB)
    q = jnp.sum(jnp.where(row == act, res, 0.0), axis=0, keepdims=True)  # (1, TB)

    err = jnp.square(tgt - q)                     # (1, TB)
    if weighted:
        err = weights_ref[...].astype(jnp.float32) * err

    partial = jnp.sum(err)                        # f32 scalar partial sum

    # Write the partial sum into element [0, 0] of this step's private
    # (8, 128) output block; the rest stays exactly zero.
    r = jax.lax.broadcasted_iota(jnp.int32, out_ref.shape, 0)
    c = jax.lax.broadcasted_iota(jnp.int32, out_ref.shape, 1)
    out_ref[...] = jnp.where((r == 0) & (c == 0), partial, 0.0)


def dtamer_loss(result, target, action, weights=None, *, tile_b=None):
    """DTAMER loss: mean(w * (target - result[arange(B), action])**2).

    result: [B, A], target: [B], action: [B] int, weights: [B] or None.
    """
    B, A = result.shape
    weighted = weights is not None

    # Lane-dense layout (batch on lanes).  The reshapes are free; the transpose
    # of `result` is the only extra copy and goes away if the caller provides
    # result in (A, B) form.
    result_t = jnp.transpose(result)                          # (A, B)
    target_r = jnp.reshape(target, (1, B))                    # (1, B)
    action_r = jnp.reshape(action.astype(jnp.int32), (1, B))  # (1, B) i32

    # Tile size along the batch/lane axis: multiple of 128, result tile <= ~1 MiB.
    if tile_b is None:
        tb = (1 << 20) // (max(A, 1) * 4)
        tb = max(128, min(4096, (tb // 128) * 128))
        tb = min(tb, _round_up(B, 128))
    else:
        assert tile_b % 128 == 0, "tile_b must be a multiple of 128"
        tb = tile_b

    b_pad = _round_up(B, tb)
    num_tiles = b_pad // tb
    pad = b_pad - B
    if pad:
        # Zero padding contributes exactly 0 to the loss (q=0, target=0, w=0).
        result_t = jnp.pad(result_t, ((0, 0), (0, pad)))
        target_r = jnp.pad(target_r, ((0, 0), (0, pad)))
        action_r = jnp.pad(action_r, ((0, 0), (0, pad)))

    if weighted:
        weights_r = jnp.reshape(weights, (1, B))
        if pad:
            weights_r = jnp.pad(weights_r, ((0, 0), (0, pad)))
        in_arrays = [result_t, target_r, weights_r, action_r]
        in_specs = [
            pl.BlockSpec((A, tb), lambda i: (0, i)),   # result (A, TB)
            pl.BlockSpec((1, tb), lambda i: (0, i)),   # target (1, TB)
            pl.BlockSpec((1, tb), lambda i: (0, i)),   # weights (1, TB)
            pl.BlockSpec((1, tb), lambda i: (0, i)),   # action (1, TB)
        ]
        n_side = 3
    else:
        in_arrays = [result_t, target_r, action_r]
        in_specs = [
            pl.BlockSpec((A, tb), lambda i: (0, i)),
            pl.BlockSpec((1, tb), lambda i: (0, i)),
            pl.BlockSpec((1, tb), lambda i: (0, i)),
        ]
        n_side = 2

    cost = pl.CostEstimate(
        flops=int(4 * b_pad * A + 4 * b_pad),
        transcendentals=0,
        bytes_accessed=int(4 * b_pad * (A + n_side) + num_tiles * 8 * 128 * 4),
    )

    partials = pl.pallas_call(
        functools.partial(_dtamer_tile_kernel, weighted=weighted),
        out_shape=jax.ShapeDtypeStruct((num_tiles * 8, 128), jnp.float32),
        grid=(num_tiles,),
        in_specs=in_specs,
        out_specs=pl.BlockSpec((8, 128), lambda i: (i, 0)),
        compiler_params=pltpu.CompilerParams(dimension_semantics=("parallel",)),
        cost_estimate=cost,
    )(*in_arrays)

    # Tiny final (pairwise) reduction + mean normalization by the true batch size.
    return jnp.sum(partials) / B


def _ref_loss(result, target, action, weights=None):
    one_hot = jax.nn.one_hot(action, result.shape[1], dtype=jnp.float32)
    q = jnp.sum(one_hot * result, axis=1)
    if weights is not None:
        return jnp.mean(weights * jnp.square(target - q))
    return jnp.mean(jnp.square(target - q))


if __name__ == "__main__":
    key = jax.random.PRNGKey(0)
    k1, k2, k3, k4 = jax.random.split(key, 4)

    # --- small case: batch=8, actionsize=4 (single tile) ---
    B, A = 8, 4
    result = jax.random.normal(k1, (B, A), dtype=jnp.float32)
    target = jax.random.normal(k2, (B,), dtype=jnp.float32)
    action = jax.random.randint(k3, (B,), 0, A, dtype=jnp.int32)
    weights = jax.random.uniform(k4, (B,), dtype=jnp.float32)

    loss_u = dtamer_loss(result, target, action, None)
    jax.block_until_ready(loss_u)
    loss_w = dtamer_loss(result, target, action, weights)
    jax.block_until_ready(loss_w)

    assert jnp.allclose(loss_u, _ref_loss(result, target, action, None),
                        rtol=1e-5, atol=1e-5), loss_u
    assert jnp.allclose(loss_w, _ref_loss(result, target, action, weights),
                        rtol=1e-5, atol=1e-5), loss_w

    # --- multi-tile + remainder padding: batch=300, tile_b=128 -> 3 grid steps ---
    k5, k6, k7, k8 = jax.random.split(jax.random.PRNGKey(1), 4)
    B2, A2 = 300, 4
    result2 = jax.random.normal(k5, (B2, A2), dtype=jnp.float32)
    target2 = jax.random.normal(k6, (B2,), dtype=jnp.float32)
    action2 = jax.random.randint(k7, (B2,), 0, A2, dtype=jnp.int32)
    weights2 = jax.random.uniform(k8, (B2,), dtype=jnp.float32)

    loss2_u = dtamer_loss(result2, target2, action2, None, tile_b=128)
    jax.block_until_ready(loss2_u)
    loss2_w = dtamer_loss(result2, target2, action2, weights2, tile_b=128)
    jax.block_until_ready(loss2_w)

    assert jnp.allclose(loss2_u, _ref_loss(result2, target2, action2, None),
                        rtol=1e-5, atol=1e-5), loss2_u
    assert jnp.allclose(loss2_w, _ref_loss(result2, target2, action2, weights2),
                        rtol=1e-5, atol=1e-5), loss2_w

    print("KERNEL_OK")
</pallas_src>

<mosaic_0001>
module attributes {stable_mosaic.version = 11 : i64} {
  func.func @_dtamer_tile_kernel(%arg0: i32, %arg1: memref<4x128xf32, #tpu.memory_space<vmem>>, %arg2: memref<1x128xf32, #tpu.memory_space<vmem>>, %arg3: memref<1x128xi32, #tpu.memory_space<vmem>>, %arg4: memref<8x128xf32, #tpu.memory_space<vmem>>) attributes {dimension_semantics = [#tpu.dimension_semantics<parallel>], iteration_bounds = array<i64: 1>, scalar_prefetch = 0 : i64, scratch_operands = 0 : i64, tpu.core_type = #tpu.core_type<tc>, window_params = [{transform_indices = @transform_0, window_bounds = array<i64: 4, 128>}, {transform_indices = @transform_1, window_bounds = array<i64: 1, 128>}, {transform_indices = @transform_2, window_bounds = array<i64: 1, 128>}, {transform_indices = @transform_3, window_bounds = array<i64: 8, 128>}]} {
    %c0 = arith.constant 0 : index
    %c0_0 = arith.constant 0 : index
    %0 = vector.load %arg1[%c0, %c0_0] : memref<4x128xf32, #tpu.memory_space<vmem>>, vector<4x128xf32>
    %c0_1 = arith.constant 0 : index
    %c0_2 = arith.constant 0 : index
    %1 = vector.load %arg2[%c0_1, %c0_2] : memref<1x128xf32, #tpu.memory_space<vmem>>, vector<1x128xf32>
    %c0_3 = arith.constant 0 : index
    %c0_4 = arith.constant 0 : index
    %2 = vector.load %arg3[%c0_3, %c0_4] : memref<1x128xi32, #tpu.memory_space<vmem>>, vector<1x128xi32>
    %3 = tpu.iota {dimensions = array<i32: 0>} : vector<4x128xi32>
    %4 = vector.broadcast %2 : vector<1x128xi32> to vector<4x128xi32>
    %5 = arith.cmpi eq, %3, %4 : vector<4x128xi32>
    %cst = arith.constant 0.000000e+00 : f32
    %6 = vector.broadcast %cst : f32 to vector<4x128xf32>
    %7 = arith.select %5, %0, %6 : vector<4x128xi1>, vector<4x128xf32>
    %cst_5 = arith.constant dense<0.000000e+00> : vector<128xf32>
    %8 = vector.multi_reduction <add>, %7, %cst_5 [0] : vector<4x128xf32> to vector<128xf32>
    %9 = vector.shape_cast %8 : vector<128xf32> to vector<1x128xf32>
    %10 = arith.subf %1, %9 : vector<1x128xf32>
    %11 = arith.mulf %10, %10 : vector<1x128xf32>
    %12 = vector.shape_cast %11 : vector<1x128xf32> to vector<1x1x128xf32>
    %cst_6 = arith.constant dense<0.000000e+00> : vector<1xf32>
    %13 = vector.multi_reduction <add>, %12, %cst_6 [1, 2] : vector<1x1x128xf32> to vector<1xf32>
    %14 = vector.shape_cast %13 : vector<1xf32> to vector<1x1x1xf32>
    %15 = vector.extract %14[0, 0, 0] : f32 from vector<1x1x1xf32>
    %16 = tpu.iota {dimensions = array<i32: 0>} : vector<8x128xi32>
    %17 = tpu.iota {dimensions = array<i32: 1>} : vector<8x128xi32>
    %c0_i32 = arith.constant 0 : i32
    %18 = vector.broadcast %c0_i32 : i32 to vector<8x128xi32>
    %19 = arith.cmpi eq, %16, %18 : vector<8x128xi32>
    %c0_i32_7 = arith.constant 0 : i32
    %20 = vector.broadcast %c0_i32_7 : i32 to vector<8x128xi32>
    %21 = arith.cmpi eq, %17, %20 : vector<8x128xi32>
    %22 = arith.andi %19, %21 : vector<8x128xi1>
    %cst_8 = arith.constant 0.000000e+00 : f32
    %23 = vector.broadcast %15 : f32 to vector<8x128xf32>
    %24 = vector.broadcast %cst_8 : f32 to vector<8x128xf32>
    %25 = arith.select %22, %23, %24 : vector<8x128xi1>, vector<8x128xf32>
    %c0_9 = arith.constant 0 : index
    %c0_10 = arith.constant 0 : index
    %26 = vector.load %arg4[%c0_9, %c0_10] : memref<8x128xf32, #tpu.memory_space<vmem>>, vector<8x128xf32>
    tpu.vector_store %arg4[%c0_9, %c0_10], %25 {strides = array<i32>} : memref<8x128xf32, #tpu.memory_space<vmem>>, vector<8x128xf32>,
    return
  }
  func.func @transform_0(%arg0: i32) -> (i32, i32) {
    %c0_i32 = arith.constant 0 : i32
    %c0_i32_0 = arith.constant 0 : i32
    return %c0_i32, %arg0 : i32, i32
  }
  func.func @transform_1(%arg0: i32) -> (i32, i32) {
    %c0_i32 = arith.constant 0 : i32
    %c0_i32_0 = arith.constant 0 : i32
    return %c0_i32, %arg0 : i32, i32
  }
  func.func @transform_2(%arg0: i32) -> (i32, i32) {
    %c0_i32 = arith.constant 0 : i32
    %c0_i32_0 = arith.constant 0 : i32
    return %c0_i32, %arg0 : i32, i32
  }
  func.func @transform_3(%arg0: i32) -> (i32, i32) {
    %c0_i32 = arith.constant 0 : i32
    %c0_i32_0 = arith.constant 0 : i32
    return %arg0, %c0_i32 : i32, i32
  }
}

</mosaic_0001>

<bundles_post_ra>
// kernel: tpu_custom_call.1
= control target key start
LH: loop header
LB: loop body
LE: loop exit
PB: predicated region body
PF: predicated region fallthrough
CT: control target
= control target key end

     0   :  { %8 = vsyncpa [#allocation3], 0  ;;  %s187_s0 = inlined_call_operand.hbm [shape: f32[4,128], index: 0, kind: input, shape index: {}]   ;;  %s188_s1 = inlined_call_operand.vmem [shape: f32[1,128], index: 1, kind: input, shape index: {}]   ;;  %s189_s2 = inlined_call_operand.vmem [shape: s32[1,128], index: 2, kind: input, shape index: {}]   ;;  %s190_s3 = inlined_call_operand.hbm [shape: f32[8,128], index: 3, kind: output, shape index: {}]  }
   0x1   :  { %9 = vsyncpa [#allocation4], 0  ;;  %s135_s12 = smov [#allocation2]   ;;  %s87_s16 = scalar_lea.hbm %s187_s0, 64 }
   0x2   :  { %s16_s13 = sshll.u32 %s135_s12, 4  ;;  %p88_p0 = scmp.ne.s32.totalorder %s187_s0, %s87_s16  ;;  %s17_s13 = int_to_ptr.vmem [resolvable:$true] %s16_s13 }
   0x3   :  { %p91_p1 = scmp.lt.u32.totalorder %s87_s16, %s187_s0 }
   0x5   :  { %p93_p2 = pnand %p91_p1, %p88_p0 }
   0x7   :  { %96 = shalt.err (!%p93_p2)
}
   0x8   :  { %s97_s21 = scalar_lea.vmem %s17_s13, 64  ;;  %p102_p4 = scmp.lt.s32.totalorder %s17_s13, %s17_s13 }
   0x9   :  { %p98_p3 = scmp.ne.s32.totalorder %s17_s13, %s97_s21  ;;  %p103_p5 = scmp.lt.s32.totalorder %s97_s21, %s97_s21 }
   0xb   :  { %p104_p6 = por %p103_p5, %p102_p4 }
   0xd   :  { %p105_p7 = pnand %p104_p6, %p98_p3 }
   0xf   :  { %108 = shalt.err (!%p105_p7)
}
  0x10   :  { %19 = dma.hbm_to_vmem [thread:$0]  %s187_s0, 64, %s17_s13, [#allocation3]  }
  0x11   :  { %131 = dma.done.wait [#allocation3], 64  }
  0x12   :  { %132 = vsyncadd [#allocation3], 4294967232  ;;  %v30_v0 = vlaneseq  ;;  %v27_v2 = vld [vmem:[#allocation2] sm:$0xf]  ;;  %vm38_vm0 = vcmask 1043456   ;;  %vm48_vm2 = vcmask 1040384  }
  0x13   :  { %v82_v3 = vld [vmem:[%s189_s2] ss:$0 sm:$0xff]  ;;  %s136_s2 = smov [#allocation5]  }
  0x14   :  { %v31_v1 = vshrl.u32 %v30_v0, 7  ;;  %v28_v11 = vld [vmem:[%s188_s1] sm:$0x1]  ;;  %v60_v23 = vand.u32 127, %v30_v0  ;;  %s73_s27 = sshll.u32 %s136_s2, 4  ;;  %s74_s27 = int_to_ptr.vmem [resolvable:$true] %s73_s27 }
  0x15   :  { %s109_s28 = scalar_lea.vmem %s74_s27, 128  ;;  %p114_p9 = scmp.lt.s32.totalorder %s74_s27, %s74_s27 }
  0x16   :  { %vm36_vm1 = vcmp.eq.s32.totalorder %v31_v1, %v82_v3  ;;  %vm61_vm3 = vcmp.eq.s32.totalorder %v31_v1, 0  ;;  %vm62_vm4 = vcmp.eq.s32.totalorder %v60_v23, 0  ;;  %p110_p8 = scmp.ne.s32.totalorder %s74_s27, %s109_s28  ;;  %p115_p10 = scmp.lt.s32.totalorder %s109_s28, %s109_s28 }
  0x17   :  { %v37_v4 = vsel %vm36_vm1, %v27_v2, 0.0  ;;  %vm63_vm5 = vmand %vm61_vm3, %vm62_vm4 }
  0x18   :  { %v39_v5 = vsel %vm38_vm0, %v37_v4, 0.0  ;;  %p116_p11 = por %p115_p10, %p114_p9 }
  0x19   :  { %v40_v6 = vrot.slane %v39_v5, 4 }
  0x1a   :  { %p117_p12 = pnand %p116_p11, %p110_p8 }
  0x1b   :  { %v41_v7 = vadd.f32 %v40_v6, %v39_v5 }
  0x1d   :  { %v42_v8 = vrot.slane %v41_v7, 2 }
  0x1f   :  { %v43_v9 = vadd.f32 %v42_v8, %v41_v7 }
  0x21   :  { %v44_v10 = vrot.slane %v43_v9, 1 }
  0x23   :  { %v45_v12 = vadd.f32 %v44_v10, %v43_v9 }
  0x25   :  { %v46_v13 = vsub.f32 %v28_v11, %v45_v12 }
  0x27   :  { %v47_v14 = vmul.f32 %v46_v13, %v46_v13 }
  0x29   :  { %v49_v15 = vsel %vm48_vm2, %v47_v14, 0.0 }
  0x2a   :  { %50 = vadd.xlane.f32.xlu0 %v49_v15 }
  0xb7   :  { %v51_v16 = vpop.xlane.xlu0 %50 }
  0xb8   :  { %v52_v17 = vrot.slane %v51_v16, 4 }
  0xba   :  { %v53_v18 = vadd.f32 %v52_v17, %v51_v16 }
  0xbc   :  { %v54_v19 = vrot.slane %v53_v18, 2 }
  0xbe   :  { %v55_v20 = vadd.f32 %v54_v19, %v53_v18 }
  0xc0   :  { %v56_v21 = vrot.slane %v55_v20, 1 }
  0xc2   :  { %v57_v22 = vadd.f32 %v56_v21, %v55_v20 }
  0xc4   :  { %83 = vpush %v57_v22 }
  0xf5   :  { %s84_s1 = spop %83 }
  0xf6   :  { %v64_v24 = vstv %s84_s1 }
  0xf7   :  { %v65_v25 = vsel %vm63_vm5, %v64_v24, 0.0 }
  0xf8   :  { %66 = vst [vmem:[#allocation5] sm:$0xff] %v65_v25 }
  0xf9   :  { %120 = shalt.err (!%p117_p12)
}
  0xfa   :  { %s121_s4 = scalar_lea.hbm %s190_s3, 128 }
  0xfb   :  { %p122_p13 = scmp.ne.s32.totalorder %s190_s3, %s121_s4  ;;  %p125_p0 = scmp.lt.u32.totalorder %s121_s4, %s190_s3 }
  0xfd   :  { %p127_p1 = pnand %p125_p0, %p122_p13 }
  0xff   :  { %130 = shalt.err (!%p127_p1)
}
 0x100   :  { %76 = dma.vmem_to_hbm [thread:$0]  %s74_s27, 128, %s190_s3, [#allocation4]  }
 0x101   :  { %133 = dma.done.wait [#allocation4], 128  }
 0x102   :  { %134 = vsyncadd [#allocation4], 4294967168 }
 0x103   :  { %80 = vsyncpa [#allocation3], 1 }
 0x104   :  { %81 = vsyncpa [#allocation4], 1 }

</bundles_post_ra>
